<compile_context>
chip_gen: v7x
topology: tpu7x:2x2x1
jax: 0.10.0
libtpu: 0.0.40
codegen_flags: <defaults>
</compile_context>

<pallas_src>
import jax
import jax.numpy as jnp
from jax.experimental import pallas as pl
from jax.experimental.pallas import tpu as pltpu


_LANE = 128
_SUBLANE = 8
_GROUP = 8                 # rows gathered per dense store in the VMEM path
_PREFETCH_DEPTH = 16       # outstanding row DMAs in the HBM-table fallback


def _round_up(x, m):
    return ((x + m - 1) // m) * m


def _vmem_capacity_bytes():
    """Physical VMEM per core; conservative (v7x) fallback if the query fails."""
    try:
        return int(pltpu.get_tpu_info().vmem_capacity_bytes)
    except Exception:
        return 64 << 20


def _pad_table(styles_table):
    """Pad to (Np, Dp): lanes to a 128 multiple, rows to a sublane multiple, and
    append a sentinel all-zeros row at index N (unknown authors / batch padding).
    The sentinel row MUST stay zero -- it implements 'unknown author -> zeros'."""
    styles_table = jnp.asarray(styles_table)
    N, D = (int(s) for s in styles_table.shape)
    Dp = max(_LANE, _round_up(max(D, 1), _LANE))
    Np = _round_up(N + 1, _SUBLANE)
    table = jnp.zeros((Np, Dp), jnp.float32)
    if N > 0:
        table = table.at[:N, :D].set(styles_table.astype(jnp.float32))
    return table, N, D


# -----------------------------------------------------------------------------
# Kernel 1: styles table resident in VMEM; gather batched into 8-row dense stores.
# -----------------------------------------------------------------------------
def _make_vmem_gather_kernel(batch_axis):
    def kernel(ids_ref, table_ref, out_ref):
        # ids_ref  : SMEM (Bp,) int32 row indices (sentinel row for unknown/padding)
        # table_ref: VMEM (Np, Dc) f32 table chunk, resident across batch steps
        # out_ref  : VMEM (TB, Dc) f32 output tile
        i = pl.program_id(batch_axis)
        tb = out_ref.shape[0]            # multiple of 8
        base = i * tb                    # hoisted out of the loop

        def group_body(g, carry):
            r0 = pl.multiple_of(g * _GROUP, _GROUP)
            # 8 dynamic-sublane loads (unrolled) -> one dense (8, Dc) store.
            rows = [table_ref[pl.ds(ids_ref[base + r0 + k], 1), :]
                    for k in range(_GROUP)]
            out_ref[pl.ds(r0, _GROUP), :] = jnp.concatenate(rows, axis=0)
            return carry

        jax.lax.fori_loop(0, tb // _GROUP, group_body, 0)

    return kernel


# -----------------------------------------------------------------------------
# Kernel 2: styles table stays in HBM; depth-16 manual per-row DMA pipeline.
# Only used when the author count alone makes even a 128-lane chunk exceed VMEM.
# -----------------------------------------------------------------------------
def _lookup_hbm_kernel(ids_ref, table_hbm, out_ref, stage_ref, sem_ref):
    i = pl.program_id(0)
    tb = out_ref.shape[0]                # multiple of 8
    base = i * tb

    def start_row(row, idx, slot):
        del row
        pltpu.make_async_copy(
            table_hbm.at[pl.ds(idx, 1), :], stage_ref.at[slot], sem_ref.at[slot]
        ).start()

    # Prime the pipeline (guard for tiny tiles where tb < depth).
    @pl.loop(0, _PREFETCH_DEPTH)
    def _(r):
        @pl.when(r < tb)
        def _():
            start_row(r, ids_ref[base + r], r)

    @pl.loop(0, tb)
    def _(r):
        slot = r % _PREFETCH_DEPTH
        # Read the id this slot will fetch NEXT *before* the wait: a .wait()
        # breaks SMEM sst->sld forwarding on the scalar path that drives DMAs.
        nxt = r + _PREFETCH_DEPTH
        has_next = nxt < tb
        next_idx = ids_ref[base + jnp.where(has_next, nxt, r)]
        # Wait descriptor only needs a source slice of matching shape; the
        # semaphore/slot identify the actual in-flight transfer.
        pltpu.make_async_copy(
            table_hbm.at[pl.ds(0, 1), :], stage_ref.at[slot], sem_ref.at[slot]
        ).wait()
        out_ref[pl.ds(r, 1), :] = stage_ref[slot]

        @pl.when(has_next)
        def _():
            start_row(nxt, next_idx, slot)


# -----------------------------------------------------------------------------
# Wrapper
# -----------------------------------------------------------------------------
def lookup_style_pallas(author_idx, styles_table=None, *, padded=None,
                        block_b=None, force_mode=None, chunk_cols=None):
    """author_idx: (B,) int32 row indices, -1 for unknown authors.
       styles_table: (N, D) float32 (or pass padded=(padded_table, N, D)).
       Returns (B, D) float32."""
    if padded is None:
        padded = _pad_table(styles_table)
    table, N, D = padded
    Np, Dp = (int(s) for s in table.shape)
    B = int(author_idx.shape[0])
    f32 = 4

    # Unknown (-1) -> sentinel zero row at index N; also clamp as a defensive
    # guard (VMEM refs have no runtime bounds check).
    idx = jnp.clip(jnp.where(author_idx >= 0, author_idx, N), 0, N).astype(jnp.int32)

    # Batch tiling: TB rows (multiple of 8) per grid step; keep >= 2 grid steps
    # for large batches so "parallel" actually uses both v7x TensorCores.
    if block_b is None:
        bp8 = _round_up(max(B, 1), _SUBLANE)
        block_b = min(1024, bp8)
        if bp8 // block_b < 2 and bp8 >= 2 * _SUBLANE:
            block_b = _round_up(pl.cdiv(bp8, 2), _SUBLANE)
    block_b = max(_SUBLANE, _round_up(int(block_b), _SUBLANE))
    Bp = _round_up(max(B, 1), block_b)
    idx_p = jnp.full((Bp,), N, jnp.int32).at[:B].set(idx)
    num_b = Bp // block_b

    table_bytes = Np * Dp * f32
    margin = 2 << 20
    capacity = _vmem_capacity_bytes()
    usable = max(capacity - (4 << 20), 16 << 20)   # headroom below physical VMEM

    cost = pl.CostEstimate(
        flops=0, transcendentals=0,
        bytes_accessed=int(table_bytes + Bp * Dp * f32 + Bp * 4))

    mode = force_mode
    if mode is None:
        if table_bytes + 2 * block_b * Dp * f32 + margin <= usable:
            mode = "vmem"          # whole table resident (single-buffered)
        elif 2 * (Np + block_b) * _LANE * f32 + margin <= usable:
            mode = "chunked"       # wide table: chunk the feature dim
        else:
            mode = "hbm"           # huge author count: per-row HBM DMAs

    if mode == "vmem":
        out_buf_bytes = 2 * block_b * Dp * f32

        def run(table_spec, needed):
            return pl.pallas_call(
                _make_vmem_gather_kernel(batch_axis=0),
                out_shape=jax.ShapeDtypeStruct((Bp, Dp), jnp.float32),
                grid_spec=pltpu.PrefetchScalarGridSpec(
                    num_scalar_prefetch=1,
                    grid=(num_b,),
                    in_specs=[table_spec],
                    out_specs=pl.BlockSpec((block_b, Dp), lambda i, ids: (i, 0))),
                compiler_params=pltpu.CompilerParams(
                    dimension_semantics=("parallel",),
                    vmem_limit_bytes=int(min(usable, max(needed, 32 << 20)))),
                cost_estimate=cost,
            )(idx_p, table)

        try:
            # Constant index map -> a second pipeline buffer is pure waste.
            spec = pl.BlockSpec((Np, Dp), lambda i, ids: (0, 0),
                                pipeline_mode=pl.Buffered(1))
            out = run(spec, table_bytes + out_buf_bytes + margin)
        except Exception:
            # Fallback for jax versions without single-buffer pipeline_mode.
            out = run(pl.BlockSpec((Np, Dp), lambda i, ids: (0, 0)),
                      2 * table_bytes + out_buf_bytes + margin)

    elif mode == "chunked":
        if chunk_cols is not None:
            Dc = max(_LANE, _round_up(int(chunk_cols), _LANE))
        else:
            per_col = 2 * (Np + block_b) * f32          # table + out, double-buffered
            Dc = ((usable - margin) // per_col) // _LANE * _LANE
            Dc = int(max(_LANE, Dc))
        Dc = min(Dc, Dp)
        Dp2 = _round_up(Dp, Dc)
        table2 = table if Dp2 == Dp else (
            jnp.zeros((Np, Dp2), jnp.float32).at[:, :Dp].set(table))
        num_d = Dp2 // Dc
        needed = 2 * Np * Dc * f32 + 2 * block_b * Dc * f32 + margin
        out = pl.pallas_call(
            _make_vmem_gather_kernel(batch_axis=1),
            out_shape=jax.ShapeDtypeStruct((Bp, Dp2), jnp.float32),
            grid_spec=pltpu.PrefetchScalarGridSpec(
                num_scalar_prefetch=1,
                grid=(num_d, num_b),     # d outermost: chunk stays resident over batch
                in_specs=[pl.BlockSpec((Np, Dc), lambda d, i, ids: (0, d))],
                out_specs=pl.BlockSpec((block_b, Dc), lambda d, i, ids: (i, d))),
            compiler_params=pltpu.CompilerParams(
                dimension_semantics=("arbitrary", "parallel"),
                vmem_limit_bytes=int(min(usable, max(needed, 32 << 20)))),
            cost_estimate=cost,
        )(idx_p, table2)

    else:  # "hbm"
        out = pl.pallas_call(
            _lookup_hbm_kernel,
            out_shape=jax.ShapeDtypeStruct((Bp, Dp), jnp.float32),
            grid_spec=pltpu.PrefetchScalarGridSpec(
                num_scalar_prefetch=1,
                grid=(num_b,),
                in_specs=[pl.BlockSpec(memory_space=pl.ANY)],
                out_specs=pl.BlockSpec((block_b, Dp), lambda i, ids: (i, 0)),
                scratch_shapes=[
                    pltpu.VMEM((_PREFETCH_DEPTH, 1, Dp), jnp.float32),
                    pltpu.SemaphoreType.DMA((_PREFETCH_DEPTH,)),
                ]),
            compiler_params=pltpu.CompilerParams(
                dimension_semantics=("parallel",)),
            cost_estimate=cost,
        )(idx_p, table)

    return out[:B, :D]


class LookupStyleJax:
    """Host-side glue mirroring the PyTorch module's author-id bookkeeping.
    The padded device table is cached and rebuilt only when authors are added."""

    def __init__(self, style_dim):
        self.style_dim = style_dim
        self._author_to_row = {}
        self._rows = []          # list of (style_dim,) float32 arrays
        self._padded_cache = None

    def add_authors(self, author_iter, key):
        for author_id in author_iter:
            key, sub = jax.random.split(key)
            # torch .normal_(0, 0.01) equivalent, deterministic from PRNGKey.
            vec = 0.01 * jax.random.normal(sub, (self.style_dim,), jnp.float32)
            self._author_to_row[author_id] = len(self._rows)
            self._rows.append(vec)
        self._padded_cache = None
        return key

    def table(self):
        if not self._rows:
            return jnp.zeros((0, self.style_dim), jnp.float32)
        return jnp.stack(self._rows, axis=0)

    def _padded(self):
        if self._padded_cache is None:
            self._padded_cache = _pad_table(self.table())
        return self._padded_cache

    def forward(self, author_ids):
        # Host-side string -> row-index resolution (unknown -> -1).
        idx = jnp.asarray(
            [self._author_to_row.get(a, -1) for a in author_ids], jnp.int32)
        return lookup_style_pallas(idx, padded=self._padded())


if __name__ == "__main__":
    style_dim = 48   # deliberately not a multiple of 128: exercises lane padding
    key = jax.random.PRNGKey(0)

    module = LookupStyleJax(style_dim)
    key = module.add_authors([f"author_{i}" for i in range(10)], key)

    # Batch of author ids: mix of known and unknown.
    batch_ids = ["author_3", "author_0", "stranger_A",
                 "author_7", "stranger_B", "author_3"]

    out = jax.block_until_ready(module.forward(batch_ids))

    # Pure-JAX reference check.
    table = module.table()
    idx = jnp.asarray(
        [module._author_to_row.get(a, -1) for a in batch_ids], jnp.int32)
    safe = jnp.clip(idx, 0, table.shape[0] - 1)
    ref = jnp.where((idx >= 0)[:, None], table[safe], 0.0)

    assert out.shape == (len(batch_ids), style_dim)
    assert out.dtype == jnp.float32
    assert jnp.array_equal(out, ref), "VMEM-table path mismatch"

    # Exercise the per-row HBM-DMA fallback (used only when the author count
    # alone exceeds the VMEM budget).
    out_hbm = jax.block_until_ready(
        lookup_style_pallas(idx, table, force_mode="hbm"))
    assert jnp.array_equal(out_hbm, ref), "HBM fallback mismatch"

    # Exercise the feature-dim-chunked path (used when D makes the table too wide
    # for VMEM): style_dim=200 -> Dp=256 -> two 128-lane chunks.
    wide_dim = 200
    key, sub = jax.random.split(key)
    wide_table = 0.01 * jax.random.normal(sub, (10, wide_dim), jnp.float32)
    ref_w = jnp.where((idx >= 0)[:, None], wide_table[safe], 0.0)
    out_w = jax.block_until_ready(
        lookup_style_pallas(idx, wide_table, force_mode="chunked", chunk_cols=128))
    assert jnp.array_equal(out_w, ref_w), "chunked-table path mismatch"

    print("KERNEL_OK")
</pallas_src>

<mosaic_0001>
module attributes {stable_mosaic.version = 11 : i64} {
  func.func @kernel(%arg0: i32, %arg1: memref<8xi32, #tpu.memory_space<smem>>, %arg2: memref<16x128xf32, #tpu.memory_space<vmem>>, %arg3: memref<8x128xf32, #tpu.memory_space<vmem>>) attributes {dimension_semantics = [#tpu.dimension_semantics<parallel>], iteration_bounds = array<i64: 1>, scalar_prefetch = 1 : i64, scratch_operands = 0 : i64, tpu.core_type = #tpu.core_type<tc>, window_params = [{pipeline_mode = #tpu.pipeline_mode<synchronous>, transform_indices = @transform_0, window_bounds = array<i64: 16, 128>}, {transform_indices = @transform_1, window_bounds = array<i64: 8, 128>}]} {
    %c8_i32 = arith.constant 8 : i32
    %0 = arith.muli %arg0, %c8_i32 : i32
    %c0_i32 = arith.constant 0 : i32
    %c8_i32_0 = arith.constant 8 : i32
    %1 = arith.muli %c0_i32, %c8_i32_0 : i32
    %2 = tpu.assume_multiple %1, 8 : i32
    %3 = arith.addi %0, %2 : i32
    %c0_i32_1 = arith.constant 0 : i32
    %4 = arith.addi %3, %c0_i32_1 : i32
    %5 = arith.index_cast %4 : i32 to index
    %6 = memref.load %arg1[%5] : memref<8xi32, #tpu.memory_space<smem>>
    %7 = arith.index_cast %6 : i32 to index
    %c0 = arith.constant 0 : index
    %8 = vector.load %arg2[%7, %c0] : memref<16x128xf32, #tpu.memory_space<vmem>>, vector<1x128xf32>
    %9 = arith.addi %0, %2 : i32
    %c1_i32 = arith.constant 1 : i32
    %10 = arith.addi %9, %c1_i32 : i32
    %11 = arith.index_cast %10 : i32 to index
    %12 = memref.load %arg1[%11] : memref<8xi32, #tpu.memory_space<smem>>
    %13 = arith.index_cast %12 : i32 to index
    %c0_2 = arith.constant 0 : index
    %14 = vector.load %arg2[%13, %c0_2] : memref<16x128xf32, #tpu.memory_space<vmem>>, vector<1x128xf32>
    %15 = arith.addi %0, %2 : i32
    %c2_i32 = arith.constant 2 : i32
    %16 = arith.addi %15, %c2_i32 : i32
    %17 = arith.index_cast %16 : i32 to index
    %18 = memref.load %arg1[%17] : memref<8xi32, #tpu.memory_space<smem>>
    %19 = arith.index_cast %18 : i32 to index
    %c0_3 = arith.constant 0 : index
    %20 = vector.load %arg2[%19, %c0_3] : memref<16x128xf32, #tpu.memory_space<vmem>>, vector<1x128xf32>
    %21 = arith.addi %0, %2 : i32
    %c3_i32 = arith.constant 3 : i32
    %22 = arith.addi %21, %c3_i32 : i32
    %23 = arith.index_cast %22 : i32 to index
    %24 = memref.load %arg1[%23] : memref<8xi32, #tpu.memory_space<smem>>
    %25 = arith.index_cast %24 : i32 to index
    %c0_4 = arith.constant 0 : index
    %26 = vector.load %arg2[%25, %c0_4] : memref<16x128xf32, #tpu.memory_space<vmem>>, vector<1x128xf32>
    %27 = arith.addi %0, %2 : i32
    %c4_i32 = arith.constant 4 : i32
    %28 = arith.addi %27, %c4_i32 : i32
    %29 = arith.index_cast %28 : i32 to index
    %30 = memref.load %arg1[%29] : memref<8xi32, #tpu.memory_space<smem>>
    %31 = arith.index_cast %30 : i32 to index
    %c0_5 = arith.constant 0 : index
    %32 = vector.load %arg2[%31, %c0_5] : memref<16x128xf32, #tpu.memory_space<vmem>>, vector<1x128xf32>
    %33 = arith.addi %0, %2 : i32
    %c5_i32 = arith.constant 5 : i32
    %34 = arith.addi %33, %c5_i32 : i32
    %35 = arith.index_cast %34 : i32 to index
    %36 = memref.load %arg1[%35] : memref<8xi32, #tpu.memory_space<smem>>
    %37 = arith.index_cast %36 : i32 to index
    %c0_6 = arith.constant 0 : index
    %38 = vector.load %arg2[%37, %c0_6] : memref<16x128xf32, #tpu.memory_space<vmem>>, vector<1x128xf32>
    %39 = arith.addi %0, %2 : i32
    %c6_i32 = arith.constant 6 : i32
    %40 = arith.addi %39, %c6_i32 : i32
    %41 = arith.index_cast %40 : i32 to index
    %42 = memref.load %arg1[%41] : memref<8xi32, #tpu.memory_space<smem>>
    %43 = arith.index_cast %42 : i32 to index
    %c0_7 = arith.constant 0 : index
    %44 = vector.load %arg2[%43, %c0_7] : memref<16x128xf32, #tpu.memory_space<vmem>>, vector<1x128xf32>
    %45 = arith.addi %0, %2 : i32
    %c7_i32 = arith.constant 7 : i32
    %46 = arith.addi %45, %c7_i32 : i32
    %47 = arith.index_cast %46 : i32 to index
    %48 = memref.load %arg1[%47] : memref<8xi32, #tpu.memory_space<smem>>
    %49 = arith.index_cast %48 : i32 to index
    %c0_8 = arith.constant 0 : index
    %50 = vector.load %arg2[%49, %c0_8] : memref<16x128xf32, #tpu.memory_space<vmem>>, vector<1x128xf32>
    %51 = tpu.concatenate %8, %14, %20, %26, %32, %38, %44, %50 in 0 : vector<1x128xf32>, vector<1x128xf32>, vector<1x128xf32>, vector<1x128xf32>, vector<1x128xf32>, vector<1x128xf32>, vector<1x128xf32>, vector<1x128xf32> -> vector<8x128xf32>
    %52 = arith.index_cast %2 : i32 to index
    %c0_9 = arith.constant 0 : index
    %53 = vector.load %arg3[%52, %c0_9] : memref<8x128xf32, #tpu.memory_space<vmem>>, vector<8x128xf32>
    tpu.vector_store %arg3[%52, %c0_9], %51 {strides = array<i32>} : memref<8x128xf32, #tpu.memory_space<vmem>>, vector<8x128xf32>,
    %c1_i32_10 = arith.constant 1 : i32
    return
  }
  func.func @transform_0(%arg0: i32, %arg1: memref<8xi32, #tpu.memory_space<smem>>) -> (i32, i32) {
    %c0_i32 = arith.constant 0 : i32
    %c0_i32_0 = arith.constant 0 : i32
    %c0_i32_1 = arith.constant 0 : i32
    return %c0_i32, %c0_i32_0 : i32, i32
  }
  func.func @transform_1(%arg0: i32, %arg1: memref<8xi32, #tpu.memory_space<smem>>) -> (i32, i32) {
    %c0_i32 = arith.constant 0 : i32
    %c0_i32_0 = arith.constant 0 : i32
    return %arg0, %c0_i32 : i32, i32
  }
}

module attributes {stable_mosaic.version = 11 : i64} {
  func.func @kernel(%arg0: i32, %arg1: memref<8xi32, #tpu.memory_space<smem>>, %arg2: memref<16x128xf32, #tpu.memory_space<vmem>>, %arg3: memref<8x128xf32, #tpu.memory_space<vmem>>) attributes {dimension_semantics = [#tpu.dimension_semantics<parallel>], iteration_bounds = array<i64: 1>, scalar_prefetch = 1 : i64, scratch_operands = 0 : i64, tpu.core_type = #tpu.core_type<tc>, window_params = [{pipeline_mode = #tpu.pipeline_mode<synchronous>, transform_indices = @transform_0, window_bounds = array<i64: 16, 128>}, {transform_indices = @transform_1, window_bounds = array<i64: 8, 128>}]} {
    %c8_i32 = arith.constant 8 : i32
    %0 = arith.muli %arg0, %c8_i32 : i32
    %c0_i32 = arith.constant 0 : i32
    %c8_i32_0 = arith.constant 8 : i32
    %1 = arith.muli %c0_i32, %c8_i32_0 : i32
    %2 = tpu.assume_multiple %1, 8 : i32
    %3 = arith.addi %0, %2 : i32
    %c0_i32_1 = arith.constant 0 : i32
    %4 = arith.addi %3, %c0_i32_1 : i32
    %5 = arith.index_cast %4 : i32 to index
    %6 = memref.load %arg1[%5] : memref<8xi32, #tpu.memory_space<smem>>
    %7 = arith.index_cast %6 : i32 to index
    %c0 = arith.constant 0 : index
    %8 = vector.load %arg2[%7, %c0] : memref<16x128xf32, #tpu.memory_space<vmem>>, vector<1x128xf32>
    %9 = arith.addi %0, %2 : i32
    %c1_i32 = arith.constant 1 : i32
    %10 = arith.addi %9, %c1_i32 : i32
    %11 = arith.index_cast %10 : i32 to index
    %12 = memref.load %arg1[%11] : memref<8xi32, #tpu.memory_space<smem>>
    %13 = arith.index_cast %12 : i32 to index
    %c0_2 = arith.constant 0 : index
    %14 = vector.load %arg2[%13, %c0_2] : memref<16x128xf32, #tpu.memory_space<vmem>>, vector<1x128xf32>
    %15 = arith.addi %0, %2 : i32
    %c2_i32 = arith.constant 2 : i32
    %16 = arith.addi %15, %c2_i32 : i32
    %17 = arith.index_cast %16 : i32 to index
    %18 = memref.load %arg1[%17] : memref<8xi32, #tpu.memory_space<smem>>
    %19 = arith.index_cast %18 : i32 to index
    %c0_3 = arith.constant 0 : index
    %20 = vector.load %arg2[%19, %c0_3] : memref<16x128xf32, #tpu.memory_space<vmem>>, vector<1x128xf32>
    %21 = arith.addi %0, %2 : i32
    %c3_i32 = arith.constant 3 : i32
    %22 = arith.addi %21, %c3_i32 : i32
    %23 = arith.index_cast %22 : i32 to index
    %24 = memref.load %arg1[%23] : memref<8xi32, #tpu.memory_space<smem>>
    %25 = arith.index_cast %24 : i32 to index
    %c0_4 = arith.constant 0 : index
    %26 = vector.load %arg2[%25, %c0_4] : memref<16x128xf32, #tpu.memory_space<vmem>>, vector<1x128xf32>
    %27 = arith.addi %0, %2 : i32
    %c4_i32 = arith.constant 4 : i32
    %28 = arith.addi %27, %c4_i32 : i32
    %29 = arith.index_cast %28 : i32 to index
    %30 = memref.load %arg1[%29] : memref<8xi32, #tpu.memory_space<smem>>
    %31 = arith.index_cast %30 : i32 to index
    %c0_5 = arith.constant 0 : index
    %32 = vector.load %arg2[%31, %c0_5] : memref<16x128xf32, #tpu.memory_space<vmem>>, vector<1x128xf32>
    %33 = arith.addi %0, %2 : i32
    %c5_i32 = arith.constant 5 : i32
    %34 = arith.addi %33, %c5_i32 : i32
    %35 = arith.index_cast %34 : i32 to index
    %36 = memref.load %arg1[%35] : memref<8xi32, #tpu.memory_space<smem>>
    %37 = arith.index_cast %36 : i32 to index
    %c0_6 = arith.constant 0 : index
    %38 = vector.load %arg2[%37, %c0_6] : memref<16x128xf32, #tpu.memory_space<vmem>>, vector<1x128xf32>
    %39 = arith.addi %0, %2 : i32
    %c6_i32 = arith.constant 6 : i32
    %40 = arith.addi %39, %c6_i32 : i32
    %41 = arith.index_cast %40 : i32 to index
    %42 = memref.load %arg1[%41] : memref<8xi32, #tpu.memory_space<smem>>
    %43 = arith.index_cast %42 : i32 to index
    %c0_7 = arith.constant 0 : index
    %44 = vector.load %arg2[%43, %c0_7] : memref<16x128xf32, #tpu.memory_space<vmem>>, vector<1x128xf32>
    %45 = arith.addi %0, %2 : i32
    %c7_i32 = arith.constant 7 : i32
    %46 = arith.addi %45, %c7_i32 : i32
    %47 = arith.index_cast %46 : i32 to index
    %48 = memref.load %arg1[%47] : memref<8xi32, #tpu.memory_space<smem>>
    %49 = arith.index_cast %48 : i32 to index
    %c0_8 = arith.constant 0 : index
    %50 = vector.load %arg2[%49, %c0_8] : memref<16x128xf32, #tpu.memory_space<vmem>>, vector<1x128xf32>
    %51 = tpu.concatenate %8, %14, %20, %26, %32, %38, %44, %50 in 0 : vector<1x128xf32>, vector<1x128xf32>, vector<1x128xf32>, vector<1x128xf32>, vector<1x128xf32>, vector<1x128xf32>, vector<1x128xf32>, vector<1x128xf32> -> vector<8x128xf32>
    %52 = arith.index_cast %2 : i32 to index
    %c0_9 = arith.constant 0 : index
    %53 = vector.load %arg3[%52, %c0_9] : memref<8x128xf32, #tpu.memory_space<vmem>>, vector<8x128xf32>
    tpu.vector_store %arg3[%52, %c0_9], %51 {strides = array<i32>} : memref<8x128xf32, #tpu.memory_space<vmem>>, vector<8x128xf32>,
    %c1_i32_10 = arith.constant 1 : i32
    return
  }
  func.func @transform_0(%arg0: i32, %arg1: memref<8xi32, #tpu.memory_space<smem>>) -> (i32, i32) {
    %c0_i32 = arith.constant 0 : i32
    %c0_i32_0 = arith.constant 0 : i32
    %c0_i32_1 = arith.constant 0 : i32
    return %c0_i32, %c0_i32_0 : i32, i32
  }
  func.func @transform_1(%arg0: i32, %arg1: memref<8xi32, #tpu.memory_space<smem>>) -> (i32, i32) {
    %c0_i32 = arith.constant 0 : i32
    %c0_i32_0 = arith.constant 0 : i32
    return %arg0, %c0_i32 : i32, i32
  }
}

</mosaic_0001>

<bundles_post_ra>
// kernel: tpu_custom_call.1
= control target key start
LH: loop header
LB: loop body
LE: loop exit
PB: predicated region body
PF: predicated region fallthrough
CT: control target
= control target key end

     0   :  { %s249_s0 = inlined_call_operand.hbm [shape: s32[8], index: 0, kind: input, shape index: {}]   ;;  %s250_s1 = inlined_call_operand.hbm [shape: f32[16,128], index: 1, kind: input, shape index: {}]   ;;  %s251_s2 = inlined_call_operand.hbm [shape: f32[8,128], index: 2, kind: output, shape index: {}]  }
   0x1   :  { %s132_s11 = scalar_lea.hbm %s249_s0, 16 }
   0x2   :  { %p133_p0 = scmp.ne.s32.totalorder %s249_s0, %s132_s11  ;;  %p136_p1 = scmp.lt.u32.totalorder %s132_s11, %s249_s0 }
   0x4   :  { %p138_p2 = pnand %p136_p1, %p133_p0 }
   0x6   :  { %141 = shalt.err (!%p138_p2)  }
   0x7   :  { %s192_s16 = smov [#allocation3]  }
   0x8   :  { %8 = dma.hbm_to_smem %s249_s0, 16, %s192_s16, [#allocation2] }
   0x9   :  { %186 = dma.done.wait [#allocation2], 16 }
   0xa   :  { %187 = vsyncadd [#allocation2], 4294967280 }
   0xb   :  { %10 = sfence }
   0xc   :  { %11 = vsyncpa [#allocation5], 0 }
   0xd   :  { %12 = vsyncpa [#allocation6], 0  ;;  %s193_s19 = smov [#allocation4]   ;;  %s142_s23 = scalar_lea.hbm %s250_s1, 256 }
   0xe   :  { %s18_s20 = sshll.u32 %s193_s19, 4  ;;  %p143_p3 = scmp.ne.s32.totalorder %s250_s1, %s142_s23  ;;  %s19_s20 = int_to_ptr.vmem [resolvable:$true] %s18_s20 }
   0xf   :  { %p146_p4 = scmp.lt.u32.totalorder %s142_s23, %s250_s1 }
  0x11   :  { %p148_p5 = pnand %p146_p4, %p143_p3 }
  0x13   :  { %151 = shalt.err (!%p148_p5)
}
  0x14   :  { %s152_s0 = scalar_lea.vmem %s19_s20, 256  ;;  %p157_p7 = scmp.lt.s32.totalorder %s19_s20, %s19_s20 }
  0x15   :  { %p153_p6 = scmp.ne.s32.totalorder %s19_s20, %s152_s0  ;;  %p158_p8 = scmp.lt.s32.totalorder %s152_s0, %s152_s0 }
  0x17   :  { %p159_p9 = por %p158_p8, %p157_p7 }
  0x19   :  { %p160_p10 = pnand %p159_p9, %p153_p6 }
  0x1b   :  { %163 = shalt.err (!%p160_p10)
}
  0x1c   :  { %s194_s28 = smov 128   ;;  %s195_s29 = smov 8  }
  0x1d   :  { %24 = dma.hbm_to_vmem [thread:$0]  %s250_s1, 256, %s19_s20, [#allocation5], %s194_s28, %s194_s28, %s195_s29  }
  0x1e   :  { %188 = dma.done.wait [#allocation5], 256  }
  0x1f   :  { %189 = vsyncadd [#allocation5], 4294967040  ;;  %s30_s4 = sld [smem:[#allocation3]]  ;;  %s120_s5 = sld [smem:[#allocation3 + $0x1]]  ;;  %vm82_vm0 = vcmask 1040384   ;;  %vm84_vm1 = vcmask 1041408  }
  0x20   :  { %s121_s6 = sld [smem:[#allocation3 + $0x2]]  ;;  %s122_s7 = sld [smem:[#allocation3 + $0x3]]  ;;  %vm86_vm2 = vcmask 1042432   ;;  %vm88_vm3 = vcmask 1043456   ;;  %vm90_vm4 = vcmask 1044480   ;;  %vm92_vm5 = vcmask 1045504  }
  0x21   :  { %s123_s8 = sld [smem:[#allocation3 + $0x4]]  ;;  %s124_s9 = sld [smem:[#allocation3 + $0x5]]  ;;  %vm94_vm6 = vcmask 1046528  }
  0x22   :  { %s125_s10 = sld [smem:[#allocation3 + $0x6]]  ;;  %s126_s11 = sld [smem:[#allocation3 + $0x7]] }
  0x23   :  { %s196_s19 = smov [#allocation7]  }
  0x24   :  { %s103_s20 = sshll.u32 %s196_s19, 4  ;;  %s104_s20 = int_to_ptr.vmem [resolvable:$true] %s103_s20 }
  0x25   :  { %s31_s12 = scalar_lea.vmem [#allocation4], %s30_s4  ;;  %s35_s13 = scalar_lea.vmem [#allocation4], %s120_s5 }
  0x26   :  { %v32_v0 = vld [vmem:[%s31_s12] sm:$0x1]  ;;  %s39_s14 = scalar_lea.vmem [#allocation4], %s121_s6  ;;  %s43_s15 = scalar_lea.vmem [#allocation4], %s122_s7 }
  0x27   :  { %v36_v1 = vld [vmem:[%s35_s13] sm:$0x1]  ;;  %s47_s1 = scalar_lea.vmem [#allocation4], %s123_s8  ;;  %s51_s16 = scalar_lea.vmem [#allocation4], %s124_s9 }
  0x28   :  { %v40_v2 = vld [vmem:[%s39_s14] sm:$0x1]  ;;  %s55_s17 = scalar_lea.vmem [#allocation4], %s125_s10  ;;  %v62_v7 = vrot.slane %v36_v1, 7  ;;  %s59_s18 = scalar_lea.vmem [#allocation4], %s126_s11 }
  0x29   :  { %v44_v3 = vld [vmem:[%s43_s15] sm:$0x1]  ;;  %v65_v8 = vrot.slane %v40_v2, 6  ;;  %s164_s21 = scalar_lea.vmem %s104_s20, 128  ;;  %p169_p12 = scmp.lt.s32.totalorder %s104_s20, %s104_s20 }
  0x2a   :  { %v48_v4 = vld [vmem:[%s47_s1] sm:$0x1]  ;;  %v68_v10 = vrot.slane %v44_v3, 5  ;;  %v83_v13 = vsel %vm82_vm0, %v32_v0, %v62_v7  ;;  %p165_p11 = scmp.ne.s32.totalorder %s104_s20, %s164_s21  ;;  %p170_p13 = scmp.lt.s32.totalorder %s164_s21, %s164_s21 }
  0x2b   :  { %v52_v5 = vld [vmem:[%s51_s16] sm:$0x1]  ;;  %v71_v11 = vrot.slane %v48_v4, 4  ;;  %v85_v15 = vsel %vm84_vm1, %v83_v13, %v65_v8 }
  0x2c   :  { %v56_v6 = vld [vmem:[%s55_s17] sm:$0x1]  ;;  %v74_v12 = vrot.slane %v52_v5, 3  ;;  %v87_v17 = vsel %vm86_vm2, %v85_v15, %v68_v10  ;;  %p171_p0 = por %p170_p13, %p169_p12 }
  0x2d   :  { %v60_v9 = vld [vmem:[%s59_s18] sm:$0x1]  ;;  %v77_v14 = vrot.slane %v56_v6, 2  ;;  %v89_v18 = vsel %vm88_vm3, %v87_v17, %v71_v11 }
  0x2e   :  { %v80_v16 = vrot.slane %v60_v9, 1  ;;  %v91_v19 = vsel %vm90_vm4, %v89_v18, %v74_v12  ;;  %p172_p1 = pnand %p171_p0, %p165_p11 }
  0x2f   :  { %v93_v20 = vsel %vm92_vm5, %v91_v19, %v77_v14 }
  0x30   :  { %v95_v21 = vsel %vm94_vm6, %v93_v20, %v80_v16 }
  0x31   :  { %96 = vst [vmem:[#allocation7] sm:$0xff] %v95_v21 }
  0x32   :  { %175 = shalt.err (!%p172_p1)
}
  0x33   :  { %s176_s24 = scalar_lea.hbm %s251_s2, 128 }
  0x34   :  { %p177_p2 = scmp.ne.s32.totalorder %s251_s2, %s176_s24  ;;  %p180_p3 = scmp.lt.u32.totalorder %s176_s24, %s251_s2 }
  0x36   :  { %p182_p4 = pnand %p180_p3, %p177_p2 }
  0x38   :  { %185 = shalt.err (!%p182_p4)
}
  0x39   :  { %106 = dma.vmem_to_hbm [thread:$0]  %s104_s20, 128, %s251_s2, [#allocation6]  }
  0x3a   :  { %190 = dma.done.wait [#allocation6], 128  }
  0x3b   :  { %191 = vsyncadd [#allocation6], 4294967168 }
  0x3c   :  { %110 = vsyncpa [#allocation5], 1 }
  0x3d   :  { %111 = vsyncpa [#allocation6], 1 }

// kernel: tpu_custom_call.1
= control target key start
LH: loop header
LB: loop body
LE: loop exit
PB: predicated region body
PF: predicated region fallthrough
CT: control target
= control target key end

     0   :  { %s249_s0 = inlined_call_operand.hbm [shape: s32[8], index: 0, kind: input, shape index: {}]   ;;  %s250_s1 = inlined_call_operand.hbm [shape: f32[16,128], index: 1, kind: input, shape index: {}]   ;;  %s251_s2 = inlined_call_operand.hbm [shape: f32[8,128], index: 2, kind: output, shape index: {}]  }
   0x1   :  { %s132_s11 = scalar_lea.hbm %s249_s0, 16 }
   0x2   :  { %p133_p0 = scmp.ne.s32.totalorder %s249_s0, %s132_s11  ;;  %p136_p1 = scmp.lt.u32.totalorder %s132_s11, %s249_s0 }
   0x4   :  { %p138_p2 = pnand %p136_p1, %p133_p0 }
   0x6   :  { %141 = shalt.err (!%p138_p2)  }
   0x7   :  { %s192_s16 = smov [#allocation3]  }
   0x8   :  { %8 = dma.hbm_to_smem %s249_s0, 16, %s192_s16, [#allocation2] }
   0x9   :  { %186 = dma.done.wait [#allocation2], 16 }
   0xa   :  { %187 = vsyncadd [#allocation2], 4294967280 }
   0xb   :  { %10 = sfence }
   0xc   :  { %11 = vsyncpa [#allocation5], 0 }
   0xd   :  { %12 = vsyncpa [#allocation6], 0  ;;  %s193_s19 = smov [#allocation4]   ;;  %s142_s23 = scalar_lea.hbm %s250_s1, 256 }
   0xe   :  { %s18_s20 = sshll.u32 %s193_s19, 4  ;;  %p143_p3 = scmp.ne.s32.totalorder %s250_s1, %s142_s23  ;;  %s19_s20 = int_to_ptr.vmem [resolvable:$true] %s18_s20 }
   0xf   :  { %p146_p4 = scmp.lt.u32.totalorder %s142_s23, %s250_s1 }
  0x11   :  { %p148_p5 = pnand %p146_p4, %p143_p3 }
  0x13   :  { %151 = shalt.err (!%p148_p5)
}
  0x14   :  { %s152_s0 = scalar_lea.vmem %s19_s20, 256  ;;  %p157_p7 = scmp.lt.s32.totalorder %s19_s20, %s19_s20 }
  0x15   :  { %p153_p6 = scmp.ne.s32.totalorder %s19_s20, %s152_s0  ;;  %p158_p8 = scmp.lt.s32.totalorder %s152_s0, %s152_s0 }
  0x17   :  { %p159_p9 = por %p158_p8, %p157_p7 }
  0x19   :  { %p160_p10 = pnand %p159_p9, %p153_p6 }
  0x1b   :  { %163 = shalt.err (!%p160_p10)
}
  0x1c   :  { %s194_s28 = smov 128   ;;  %s195_s29 = smov 8  }
  0x1d   :  { %24 = dma.hbm_to_vmem [thread:$0]  %s250_s1, 256, %s19_s20, [#allocation5], %s194_s28, %s194_s28, %s195_s29  }
  0x1e   :  { %188 = dma.done.wait [#allocation5], 256  }
  0x1f   :  { %189 = vsyncadd [#allocation5], 4294967040  ;;  %s30_s4 = sld [smem:[#allocation3]]  ;;  %s120_s5 = sld [smem:[#allocation3 + $0x1]]  ;;  %vm82_vm0 = vcmask 1040384   ;;  %vm84_vm1 = vcmask 1041408  }
  0x20   :  { %s121_s6 = sld [smem:[#allocation3 + $0x2]]  ;;  %s122_s7 = sld [smem:[#allocation3 + $0x3]]  ;;  %vm86_vm2 = vcmask 1042432   ;;  %vm88_vm3 = vcmask 1043456   ;;  %vm90_vm4 = vcmask 1044480   ;;  %vm92_vm5 = vcmask 1045504  }
  0x21   :  { %s123_s8 = sld [smem:[#allocation3 + $0x4]]  ;;  %s124_s9 = sld [smem:[#allocation3 + $0x5]]  ;;  %vm94_vm6 = vcmask 1046528  }
  0x22   :  { %s125_s10 = sld [smem:[#allocation3 + $0x6]]  ;;  %s126_s11 = sld [smem:[#allocation3 + $0x7]] }
  0x23   :  { %s196_s19 = smov [#allocation7]  }
  0x24   :  { %s103_s20 = sshll.u32 %s196_s19, 4  ;;  %s104_s20 = int_to_ptr.vmem [resolvable:$true] %s103_s20 }
  0x25   :  { %s31_s12 = scalar_lea.vmem [#allocation4], %s30_s4  ;;  %s35_s13 = scalar_lea.vmem [#allocation4], %s120_s5 }
  0x26   :  { %v32_v0 = vld [vmem:[%s31_s12] sm:$0x1]  ;;  %s39_s14 = scalar_lea.vmem [#allocation4], %s121_s6  ;;  %s43_s15 = scalar_lea.vmem [#allocation4], %s122_s7 }
  0x27   :  { %v36_v1 = vld [vmem:[%s35_s13] sm:$0x1]  ;;  %s47_s1 = scalar_lea.vmem [#allocation4], %s123_s8  ;;  %s51_s16 = scalar_lea.vmem [#allocation4], %s124_s9 }
  0x28   :  { %v40_v2 = vld [vmem:[%s39_s14] sm:$0x1]  ;;  %s55_s17 = scalar_lea.vmem [#allocation4], %s125_s10  ;;  %v62_v7 = vrot.slane %v36_v1, 7  ;;  %s59_s18 = scalar_lea.vmem [#allocation4], %s126_s11 }
  0x29   :  { %v44_v3 = vld [vmem:[%s43_s15] sm:$0x1]  ;;  %v65_v8 = vrot.slane %v40_v2, 6  ;;  %s164_s21 = scalar_lea.vmem %s104_s20, 128  ;;  %p169_p12 = scmp.lt.s32.totalorder %s104_s20, %s104_s20 }
  0x2a   :  { %v48_v4 = vld [vmem:[%s47_s1] sm:$0x1]  ;;  %v68_v10 = vrot.slane %v44_v3, 5  ;;  %v83_v13 = vsel %vm82_vm0, %v32_v0, %v62_v7  ;;  %p165_p11 = scmp.ne.s32.totalorder %s104_s20, %s164_s21  ;;  %p170_p13 = scmp.lt.s32.totalorder %s164_s21, %s164_s21 }
  0x2b   :  { %v52_v5 = vld [vmem:[%s51_s16] sm:$0x1]  ;;  %v71_v11 = vrot.slane %v48_v4, 4  ;;  %v85_v15 = vsel %vm84_vm1, %v83_v13, %v65_v8 }
  0x2c   :  { %v56_v6 = vld [vmem:[%s55_s17] sm:$0x1]  ;;  %v74_v12 = vrot.slane %v52_v5, 3  ;;  %v87_v17 = vsel %vm86_vm2, %v85_v15, %v68_v10  ;;  %p171_p0 = por %p170_p13, %p169_p12 }
  0x2d   :  { %v60_v9 = vld [vmem:[%s59_s18] sm:$0x1]  ;;  %v77_v14 = vrot.slane %v56_v6, 2  ;;  %v89_v18 = vsel %vm88_vm3, %v87_v17, %v71_v11 }
  0x2e   :  { %v80_v16 = vrot.slane %v60_v9, 1  ;;  %v91_v19 = vsel %vm90_vm4, %v89_v18, %v74_v12  ;;  %p172_p1 = pnand %p171_p0, %p165_p11 }
  0x2f   :  { %v93_v20 = vsel %vm92_vm5, %v91_v19, %v77_v14 }
  0x30   :  { %v95_v21 = vsel %vm94_vm6, %v93_v20, %v80_v16 }
  0x31   :  { %96 = vst [vmem:[#allocation7] sm:$0xff] %v95_v21 }
  0x32   :  { %175 = shalt.err (!%p172_p1)
}
  0x33   :  { %s176_s24 = scalar_lea.hbm %s251_s2, 128 }
  0x34   :  { %p177_p2 = scmp.ne.s32.totalorder %s251_s2, %s176_s24  ;;  %p180_p3 = scmp.lt.u32.totalorder %s176_s24, %s251_s2 }
  0x36   :  { %p182_p4 = pnand %p180_p3, %p177_p2 }
  0x38   :  { %185 = shalt.err (!%p182_p4)
}
  0x39   :  { %106 = dma.vmem_to_hbm [thread:$0]  %s104_s20, 128, %s251_s2, [#allocation6]  }
  0x3a   :  { %190 = dma.done.wait [#allocation6], 128  }
  0x3b   :  { %191 = vsyncadd [#allocation6], 4294967168 }
  0x3c   :  { %110 = vsyncpa [#allocation5], 1 }
  0x3d   :  { %111 = vsyncpa [#allocation6], 1 }

</bundles_post_ra>
